<compile_context>
chip_gen: v6e
topology: v6e:2x2x1
jax: 0.10.0
libtpu: 0.0.40
codegen_flags: <defaults>
</compile_context>

<pallas_src>
import functools

import jax
import jax.numpy as jnp
from jax.experimental import pallas as pl
from jax.experimental.pallas import tpu as pltpu

EPS = 1e-5


def _double_bn_kernel(x_ref, o_ref, *, n, c):
    # x_ref: (n*c, m) float32, rows ordered [b0c0, b0c1, ..., b0c{C-1}, b1c0, ...].
    x = x_ref[...]
    m = x.shape[1]
    inv_count = 1.0 / float(n * m)

    # One pass over the (vreg-resident) data: per-row lane sums of x and x*x.
    s1 = jnp.sum(x, axis=1, keepdims=True)       # (n*c, 1)
    s2 = jnp.sum(x * x, axis=1, keepdims=True)   # (n*c, 1)

    # Cross-batch part of the per-channel reduction: rotate the lane-sums by
    # multiples of C (sublane rotation, XLU) and accumulate.  Because the
    # sublane extent is exactly n*c, the per-channel total ends up replicated
    # in every (batch, channel) row — i.e. already broadcast for the
    # normalize pass below.
    t1, t2 = s1, s2
    for b in range(1, n):
        t1 = t1 + pltpu.roll(s1, shift=b * c, axis=0)
        t2 = t2 + pltpu.roll(s2, shift=b * c, axis=0)

    mean = t1 * inv_count
    # Single-pass biased variance; clamp against tiny negative values from
    # E[x^2] - mean^2 cancellation (slightly less robust than the centered
    # two-pass form for extreme mean/var ratios — fine for activations).
    var = jnp.maximum(t2 * inv_count - mean * mean, 0.0)

    # BatchNorm applied twice (second one sees mean 0, var = var/(var+eps)):
    #   scale = rsqrt((var+eps) * (var/(var+eps) + eps)) = rsqrt(var*(1+eps) + eps^2)
    scale = jax.lax.rsqrt(var * (1.0 + EPS) + EPS * EPS)

    o_ref[...] = ((x - mean) * scale).astype(o_ref.dtype)


def model_forward(x):
    """x: (N, C, H, W) float32, NCHW like the PyTorch module."""
    N, C, H, W = x.shape
    NC, M = N * C, H * W
    x_r = x.reshape(NC, M)  # contiguous reshape — no transpose, no copy

    y_r = pl.pallas_call(
        functools.partial(_double_bn_kernel, n=N, c=C),
        out_shape=jax.ShapeDtypeStruct((NC, M), x.dtype),
        in_specs=[pl.BlockSpec((NC, M), lambda: (0, 0))],
        out_specs=pl.BlockSpec((NC, M), lambda: (0, 0)),
    )(x_r)

    return y_r.reshape(N, C, H, W)


def _reference(x):
    """Pure-JAX reference: two BatchNorm2d(affine=False) in training mode."""
    def bn(v):
        mu = jnp.mean(v, axis=(0, 2, 3), keepdims=True)
        var = jnp.var(v, axis=(0, 2, 3), keepdims=True)  # biased
        return (v - mu) * jax.lax.rsqrt(var + EPS)
    return bn(bn(x))


if __name__ == "__main__":
    key = jax.random.PRNGKey(0)
    x = jax.random.normal(key, (2, 4, 16, 16), dtype=jnp.float32) * 3.0 + 1.5

    out = jax.jit(model_forward)(x)
    out = jax.block_until_ready(out)

    # Correctness vs. pure-JAX double batch-norm reference.
    ref = _reference(x)
    assert out.shape == (2, 4, 16, 16)
    assert jnp.max(jnp.abs(out - ref)) < 1e-4

    # Sanity: per-channel mean ~0, biased std ~1 after the double batch-norm.
    means = jnp.mean(out, axis=(0, 2, 3))
    stds = jnp.std(out, axis=(0, 2, 3))
    assert jnp.all(jnp.abs(means) < 1e-4)
    assert jnp.all(jnp.abs(stds - 1.0) < 1e-2)

    print("KERNEL_OK")
</pallas_src>

<mosaic_0001>
module attributes {stable_mosaic.version = 11 : i64} {
  func.func @_double_bn_kernel(%arg0: memref<8x256xf32, #tpu.memory_space<vmem>>, %arg1: memref<8x256xf32, #tpu.memory_space<vmem>>) attributes {dimension_semantics = [], scalar_prefetch = 0 : i64, scratch_operands = 0 : i64, tpu.core_type = #tpu.core_type<tc>} {
    %c0 = arith.constant 0 : index
    %c0_0 = arith.constant 0 : index
    %0 = vector.load %arg0[%c0, %c0_0] : memref<8x256xf32, #tpu.memory_space<vmem>>, vector<8x256xf32>
    %cst = arith.constant dense<0.000000e+00> : vector<8xf32>
    %1 = vector.multi_reduction <add>, %0, %cst [1] : vector<8x256xf32> to vector<8xf32>
    %2 = vector.shape_cast %1 : vector<8xf32> to vector<8x1xf32>
    %3 = arith.mulf %0, %0 : vector<8x256xf32>
    %cst_1 = arith.constant dense<0.000000e+00> : vector<8xf32>
    %4 = vector.multi_reduction <add>, %3, %cst_1 [1] : vector<8x256xf32> to vector<8xf32>
    %5 = vector.shape_cast %4 : vector<8xf32> to vector<8x1xf32>
    %c4_i32 = arith.constant 4 : i32
    %6 = tpu.dynamic_rotate %2 by %c4_i32 dim 0 : vector<8x1xf32>, i32 -> vector<8x1xf32>
    %7 = arith.addf %2, %6 : vector<8x1xf32>
    %c4_i32_2 = arith.constant 4 : i32
    %8 = tpu.dynamic_rotate %5 by %c4_i32_2 dim 0 : vector<8x1xf32>, i32 -> vector<8x1xf32>
    %9 = arith.addf %5, %8 : vector<8x1xf32>
    %cst_3 = arith.constant 0.001953125 : f32
    %10 = vector.broadcast %cst_3 : f32 to vector<8x1xf32>
    %11 = arith.mulf %7, %10 : vector<8x1xf32>
    %cst_4 = arith.constant 0.001953125 : f32
    %12 = vector.broadcast %cst_4 : f32 to vector<8x1xf32>
    %13 = arith.mulf %9, %12 : vector<8x1xf32>
    %14 = arith.mulf %11, %11 : vector<8x1xf32>
    %15 = arith.subf %13, %14 : vector<8x1xf32>
    %cst_5 = arith.constant 0.000000e+00 : f32
    %16 = vector.broadcast %cst_5 : f32 to vector<8x1xf32>
    %17 = arith.maximumf %15, %16 : vector<8x1xf32>
    %cst_6 = arith.constant 1.000010e+00 : f32
    %18 = vector.broadcast %cst_6 : f32 to vector<8x1xf32>
    %19 = arith.mulf %17, %18 : vector<8x1xf32>
    %cst_7 = arith.constant 1.000000e-10 : f32
    %20 = vector.broadcast %cst_7 : f32 to vector<8x1xf32>
    %21 = arith.addf %19, %20 : vector<8x1xf32>
    %22 = math.rsqrt %21 : vector<8x1xf32>
    %23 = vector.broadcast %11 : vector<8x1xf32> to vector<8x256xf32>
    %24 = arith.subf %0, %23 : vector<8x256xf32>
    %25 = vector.broadcast %22 : vector<8x1xf32> to vector<8x256xf32>
    %26 = arith.mulf %24, %25 : vector<8x256xf32>
    %c0_8 = arith.constant 0 : index
    %c0_9 = arith.constant 0 : index
    %27 = vector.load %arg1[%c0_8, %c0_9] : memref<8x256xf32, #tpu.memory_space<vmem>>, vector<8x256xf32>
    tpu.vector_store %arg1[%c0_8, %c0_9], %26 {strides = array<i32>} : memref<8x256xf32, #tpu.memory_space<vmem>>, vector<8x256xf32>,
    return
  }
}

</mosaic_0001>

<bundles_post_ra>
// kernel: model_forward.1
= control target key start
LH: loop header
LB: loop body
LE: loop exit
PB: predicated region body
PF: predicated region fallthrough
CT: control target
= control target key end

     0   :  { %v55_v6 = vmov 0   ;;  %s78_s0 = inlined_call_operand.vmem [shape: f32[8,256], index: 0, kind: input, shape index: {}]   ;;  %s79_s1 = inlined_call_operand.vmem [shape: f32[8,256], index: 1, kind: output, shape index: {}]  }
   0x1   :  { %v8_v0 = vld [vmem:[%s78_s0] sm:$0xff]  ;;  %v9_v1 = vld [vmem:[%s78_s0 + $0x8] sm:$0xff]  ;;  %51 = vset.pattern.permute.xlu1 %v55_v6  ;;  %52 = vset.pattern.permute.xlu0 %v55_v6 }
   0x2   :  { %v10_v2 = vadd.f32 %v9_v1, %v8_v0  ;;  %v13_v3 = vmul.f32 %v8_v0, %v8_v0  ;;  %v14_v4 = vmul.f32 %v9_v1, %v9_v1 }
   0x4   :  { %11 = vadd.xlane.f32.xlu0 %v10_v2  ;;  %v15_v5 = vadd.f32 %v14_v4, %v13_v3 }
   0x8   :  { %16 = vadd.xlane.f32.xlu0 %v15_v5 }
  0x8d   :  { %v12_v7 = vpop.xlane.xlu0 %11 }
  0x8e   :  { %v18_v8 = vrot.slane %v12_v7, 4 }
  0x90   :  { %v19_v9 = vadd.f32 %v18_v8, %v12_v7 }
  0x91   :  { %v17_v10 = vpop.xlane.xlu0 %16 }
  0x92   :  { %v20_v11 = vrot.slane %v17_v10, 4  ;;  %v22_v12 = vmul.f32 0.001953125, %v19_v9 }
  0x94   :  { %v21_v13 = vadd.f32 %v20_v11, %v17_v10  ;;  %32 = vperm.xlu1 %51, %v22_v12   ;;  %v24_v15 = vmul.f32 %v22_v12, %v22_v12 }
  0x96   :  { %v23_v14 = vmul.f32 0.001953125, %v21_v13 }
  0x98   :  { %v25_v16 = vsub.f32 %v23_v14, %v24_v15 }
  0x9a   :  { %v26_v17 = vmax.f32 %v25_v16, 0.0 }
  0x9c   :  { %v27_v18 = vmul.f32 1.00001, %v26_v17 }
  0x9e   :  { %v28_v19 = vadd.f32 1e-10, %v27_v18 }
  0xa0   :  { %53 = vrsqrt.f32 %v28_v19 }
  0xad   :  { %v54_v20 = vpop.eup %53 }
  0xae   :  { %39 = vperm.xlu1 %51, %v54_v20  }
 0x10f   :  { %v33_v21 = vpop.permute.xlu1 %32 }
 0x110   :  { %v35_v22 = vsub.f32 %v8_v0, %v33_v21  ;;  %v36_v23 = vsub.f32 %v9_v1, %v33_v21 }
 0x129   :  { %v40_v24 = vpop.permute.xlu1 %39 }
 0x12a   :  { %v42_v25 = vmul.f32 %v40_v24, %v35_v22  ;;  %v43_v26 = vmul.f32 %v40_v24, %v36_v23 }
 0x12c   :  { %44 = vst [vmem:[%s79_s1] sm:$0xff] %v42_v25  ;;  %45 = vst [vmem:[%s79_s1 + $0x8] sm:$0xff] %v43_v26 }

</bundles_post_ra>
